<compile_context>
chip_gen: v6e
topology: v6e:2x2x1
jax: 0.10.0
libtpu: 0.0.40
codegen_flags: <defaults>
</compile_context>

<pallas_src>
import functools

import jax
import jax.numpy as jnp
from jax.experimental import pallas as pl
from jax.experimental.pallas import tpu as pltpu


def _cdiv(a, b):
    return -(-a // b)


def _round_up(x, m):
    return _cdiv(x, m) * m


def _class_stats_kernel(losses_ref, labels_ref, sum_ref, cnt_ref, *,
                        n_samples, n_classes, tile_r, inner_steps):
    # losses_ref / labels_ref : (tile_r, 128) f32 / i32 block of the sample stream
    # sum_ref / cnt_ref       : (1, C, 8, 128) f32 per-chunk per-class partial accumulators
    p = pl.program_id(0)          # parallel chunk (megacore axis on v7x)
    i = pl.program_id(1)          # sequential blocks within the chunk

    @pl.when(i == 0)
    def _init():
        sum_ref[...] = jnp.zeros_like(sum_ref)
        cnt_ref[...] = jnp.zeros_like(cnt_ref)

    losses = losses_ref[...]                                   # (tile_r, 128) f32
    labels = labels_ref[...]                                   # (tile_r, 128) i32

    # Global (logical, unclamped) sample index of every element in this block.
    # Kills: pad elements, unspecified tails of partial blocks, and clamped extra steps.
    step = p * inner_steps + i
    base = step * (tile_r * 128)
    ridx = jax.lax.broadcasted_iota(jnp.int32, (tile_r, 128), 0)
    lidx = jax.lax.broadcasted_iota(jnp.int32, (tile_r, 128), 1)
    valid = (base + ridx * 128 + lidx) < n_samples
    labels_m = jnp.where(valid, labels, -1)                    # -1 matches no class

    # Per-class masked count / sum, folded to one (8, 128) vreg per class with pure
    # vreg adds (no wide accumulator RMW, no cross-lane work until the wrapper).
    for c in range(n_classes):                                 # static unroll, C is small
        m = labels_m == c                                      # (tile_r, 128) bool
        mf = m.astype(jnp.float32)
        lf = jnp.where(m, losses, 0.0)
        cnt_fold = jnp.sum(mf.reshape(tile_r // 8, 8, 128), axis=0)   # (8, 128)
        sum_fold = jnp.sum(lf.reshape(tile_r // 8, 8, 128), axis=0)   # (8, 128)
        cnt_ref[0, c, :, :] = cnt_ref[0, c, :, :] + cnt_fold
        sum_ref[0, c, :, :] = sum_ref[0, c, :, :] + sum_fold


@functools.partial(jax.jit, static_argnames=("tile_rows", "num_chunks"))
def lhcvar_loss(losses, labels, alpha, threshold, *, tile_rows=512, num_chunks=2):
    """Returns (loss_scalar, updated_threshold_scalar) — mirrors forward() + threshold update."""
    N = losses.shape[0]
    C = alpha.shape[0]

    losses = losses.astype(jnp.float32)
    labels = labels.astype(jnp.int32)

    # Dense (R, 128) layout: free bitcast when N % 1024 == 0, otherwise one small pad copy
    # (pad values are masked out in-kernel via the global index < N check).
    n_pad = _round_up(max(N, 1), 8 * 128)
    pad = n_pad - N
    if pad:
        losses = jnp.pad(losses, (0, pad))
        labels = jnp.pad(labels, (0, pad), constant_values=-1)
    R = n_pad // 128
    losses2 = losses.reshape(R, 128)
    labels2 = labels.reshape(R, 128)

    tile_r = max(8, min(_round_up(tile_rows, 8), R))           # multiple of 8, <= R
    nblocks = _cdiv(R, tile_r)
    P = max(1, min(num_chunks, nblocks))                       # parallel sample chunks
    inner = _cdiv(nblocks, P)

    def in_map(p, i):
        # Clamp so "extra" steps (P * inner > nblocks) re-read the last real block;
        # their contribution is zeroed by the in-kernel validity mask.
        return (jnp.minimum(p * inner + i, nblocks - 1), 0)

    kernel = functools.partial(_class_stats_kernel, n_samples=N, n_classes=C,
                               tile_r=tile_r, inner_steps=inner)

    sums, cnts = pl.pallas_call(
        kernel,
        out_shape=(jax.ShapeDtypeStruct((P, C, 8, 128), jnp.float32),
                   jax.ShapeDtypeStruct((P, C, 8, 128), jnp.float32)),
        grid=(P, inner),
        in_specs=[
            pl.BlockSpec((tile_r, 128), in_map),               # losses
            pl.BlockSpec((tile_r, 128), in_map),               # labels
        ],
        out_specs=(
            pl.BlockSpec((1, C, 8, 128), lambda p, i: (p, 0, 0, 0)),
            pl.BlockSpec((1, C, 8, 128), lambda p, i: (p, 0, 0, 0)),
        ),
        compiler_params=pltpu.CompilerParams(
            dimension_semantics=("parallel", "arbitrary"),
            vmem_limit_bytes=32 * 1024 * 1024,
        ),
    )(losses2, labels2)

    # Tiny O(C) epilogue (threshold + loss) in plain JAX, per the perf review.
    class_sums = jnp.sum(sums, axis=(0, 2, 3))                 # (C,)
    class_cnts = jnp.sum(cnts, axis=(0, 2, 3))                 # (C,)
    present = class_cnts > 0.0                                 # classes in label_set
    mcl = class_sums / jnp.maximum(class_cnts, 1.0)            # mean class losses

    # strat == 'max': threshold = min(old_threshold, max(mean_class_losses))
    max_mcl = jnp.max(jnp.where(present, mcl, -jnp.inf))
    thr = jnp.minimum(jnp.asarray(threshold, jnp.float32), max_mcl)

    class_p = class_cnts * jnp.float32(1.0 / N)
    inner_term = jnp.where(present,
                           class_p * jnp.maximum(mcl - thr, 0.0) / alpha.astype(jnp.float32),
                           0.0)
    loss = jnp.sum(inner_term) + thr * jnp.float32(N)
    return loss, thr


def _reference(losses, labels, alpha, threshold):
    """Pure-JAX reference mirroring the PyTorch forward (strat='max')."""
    losses = losses.astype(jnp.float32)
    N = losses.shape[0]
    C = alpha.shape[0]
    mcls, cts, present = [], [], []
    for c in range(C):
        mask = labels == c
        n_c = jnp.sum(mask.astype(jnp.float32))
        present.append(n_c > 0)
        cts.append(n_c / N)
        mcls.append(jnp.sum(jnp.where(mask, losses, 0.0)) / jnp.maximum(n_c, 1.0))
    mcls = jnp.stack(mcls)
    cts = jnp.stack(cts)
    present = jnp.stack(present)
    thr = jnp.minimum(jnp.asarray(threshold, jnp.float32),
                      jnp.max(jnp.where(present, mcls, -jnp.inf)))
    inner = jnp.where(present, cts * jnp.maximum(mcls - thr, 0.0) / alpha, 0.0)
    return jnp.sum(inner) + thr * N, thr


if __name__ == "__main__":
    key = jax.random.PRNGKey(0)
    k1, k2, k3, k4 = jax.random.split(key, 4)

    C = 5
    alpha = jnp.linspace(0.2, 0.9, C).astype(jnp.float32)

    # Case A: small batch (single block, parallel chunks collapse to 1).
    N_a = 300
    losses_a = jax.random.uniform(k1, (N_a,), jnp.float32, minval=0.0, maxval=3.0)
    labels_a = jax.random.randint(k2, (N_a,), 0, C, dtype=jnp.int32)

    # Case B: a few thousand samples with tiny tiles to exercise multi-block streaming,
    # the 2-chunk parallel split, clamped extra steps, and in-kernel tail masking.
    N_b = 2500
    losses_b = jax.random.uniform(k3, (N_b,), jnp.float32, minval=0.0, maxval=3.0)
    labels_b = jax.random.randint(k4, (N_b,), 0, C, dtype=jnp.int32)

    cases = [
        (losses_a, labels_a, 10.0, dict()),
        (losses_a, labels_a, 0.5, dict()),
        (losses_b, labels_b, 10.0, dict(tile_rows=8, num_chunks=2)),
        (losses_b, labels_b, 0.5, dict(tile_rows=8, num_chunks=2)),
    ]

    for losses, labels, threshold, kw in cases:
        loss_val, new_thr = lhcvar_loss(losses, labels, alpha,
                                        jnp.float32(threshold), **kw)
        loss_val = jax.block_until_ready(loss_val)
        new_thr = jax.block_until_ready(new_thr)

        ref_loss, ref_thr = _reference(losses, labels, alpha, jnp.float32(threshold))
        assert jnp.allclose(loss_val, ref_loss, rtol=1e-5, atol=1e-3), \
            (threshold, kw, float(loss_val), float(ref_loss))
        assert jnp.allclose(new_thr, ref_thr, rtol=1e-5, atol=1e-5), \
            (threshold, kw, float(new_thr), float(ref_thr))

    print("KERNEL_OK")
</pallas_src>

<mosaic_0001>
module attributes {stable_mosaic.version = 11 : i64} {
  func.func @_class_stats_kernel(%arg0: i32, %arg1: i32, %arg2: memref<8x128xf32, #tpu.memory_space<vmem>>, %arg3: memref<8x128xi32, #tpu.memory_space<vmem>>, %arg4: memref<1x5x8x128xf32, #tpu.memory_space<vmem>>, %arg5: memref<1x5x8x128xf32, #tpu.memory_space<vmem>>) attributes {dimension_semantics = [#tpu.dimension_semantics<parallel>, #tpu.dimension_semantics<arbitrary>], iteration_bounds = array<i64: 1, 1>, scalar_prefetch = 0 : i64, scratch_operands = 0 : i64, tpu.core_type = #tpu.core_type<tc>, window_params = [{transform_indices = @transform_0, window_bounds = array<i64: 8, 128>}, {transform_indices = @transform_1, window_bounds = array<i64: 8, 128>}, {transform_indices = @transform_2, window_bounds = array<i64: 1, 5, 8, 128>}, {transform_indices = @transform_3, window_bounds = array<i64: 1, 5, 8, 128>}]} {
    %c0_i32 = arith.constant 0 : i32
    %0 = arith.cmpi eq, %arg1, %c0_i32 : i32
    %1 = arith.extui %0 : i1 to i32
    %c0_i32_0 = arith.constant 0 : i32
    %2 = arith.cmpi ne, %1, %c0_i32_0 : i32
    scf.if %2 {
      %cst_96 = arith.constant 0.000000e+00 : f32
      %129 = vector.broadcast %cst_96 : f32 to vector<1x5x8x128xf32>
      %c0_97 = arith.constant 0 : index
      %c0_98 = arith.constant 0 : index
      %c0_99 = arith.constant 0 : index
      %c0_100 = arith.constant 0 : index
      %130 = vector.load %arg4[%c0_97, %c0_98, %c0_99, %c0_100] : memref<1x5x8x128xf32, #tpu.memory_space<vmem>>, vector<1x5x8x128xf32>
      tpu.vector_store %arg4[%c0_97, %c0_98, %c0_99, %c0_100], %129 {strides = array<i32>} : memref<1x5x8x128xf32, #tpu.memory_space<vmem>>, vector<1x5x8x128xf32>,
      %cst_101 = arith.constant 0.000000e+00 : f32
      %131 = vector.broadcast %cst_101 : f32 to vector<1x5x8x128xf32>
      %c0_102 = arith.constant 0 : index
      %c0_103 = arith.constant 0 : index
      %c0_104 = arith.constant 0 : index
      %c0_105 = arith.constant 0 : index
      %132 = vector.load %arg5[%c0_102, %c0_103, %c0_104, %c0_105] : memref<1x5x8x128xf32, #tpu.memory_space<vmem>>, vector<1x5x8x128xf32>
      tpu.vector_store %arg5[%c0_102, %c0_103, %c0_104, %c0_105], %131 {strides = array<i32>} : memref<1x5x8x128xf32, #tpu.memory_space<vmem>>, vector<1x5x8x128xf32>,
    } else {
    }
    %c0 = arith.constant 0 : index
    %c0_1 = arith.constant 0 : index
    %3 = vector.load %arg2[%c0, %c0_1] : memref<8x128xf32, #tpu.memory_space<vmem>>, vector<8x128xf32>
    %c0_2 = arith.constant 0 : index
    %c0_3 = arith.constant 0 : index
    %4 = vector.load %arg3[%c0_2, %c0_3] : memref<8x128xi32, #tpu.memory_space<vmem>>, vector<8x128xi32>
    %c1_i32 = arith.constant 1 : i32
    %5 = arith.muli %arg0, %c1_i32 : i32
    %6 = arith.addi %5, %arg1 : i32
    %c1024_i32 = arith.constant 1024 : i32
    %7 = arith.muli %6, %c1024_i32 : i32
    %8 = tpu.iota {dimensions = array<i32: 0>} : vector<8x128xi32>
    %9 = tpu.iota {dimensions = array<i32: 1>} : vector<8x128xi32>
    %c128_i32 = arith.constant 128 : i32
    %10 = vector.broadcast %c128_i32 : i32 to vector<8x128xi32>
    %11 = arith.muli %8, %10 : vector<8x128xi32>
    %12 = vector.broadcast %7 : i32 to vector<8x128xi32>
    %13 = arith.addi %12, %11 : vector<8x128xi32>
    %14 = arith.addi %13, %9 : vector<8x128xi32>
    %c300_i32 = arith.constant 300 : i32
    %15 = vector.broadcast %c300_i32 : i32 to vector<8x128xi32>
    %16 = arith.cmpi slt, %14, %15 : vector<8x128xi32>
    %c-1_i32 = arith.constant -1 : i32
    %17 = vector.broadcast %c-1_i32 : i32 to vector<8x128xi32>
    %18 = arith.select %16, %4, %17 : vector<8x128xi1>, vector<8x128xi32>
    %c0_i32_4 = arith.constant 0 : i32
    %19 = vector.broadcast %c0_i32_4 : i32 to vector<8x128xi32>
    %20 = arith.cmpi eq, %18, %19 : vector<8x128xi32>
    %21 = arith.extui %20 : vector<8x128xi1> to vector<8x128xi32>
    %22 = arith.sitofp %21 : vector<8x128xi32> to vector<8x128xf32>
    %cst = arith.constant 0.000000e+00 : f32
    %23 = vector.broadcast %cst : f32 to vector<8x128xf32>
    %24 = arith.select %20, %3, %23 : vector<8x128xi1>, vector<8x128xf32>
    %25 = vector.shape_cast %22 : vector<8x128xf32> to vector<1x8x128xf32>
    %cst_5 = arith.constant dense<0.000000e+00> : vector<8x128xf32>
    %26 = vector.multi_reduction <add>, %25, %cst_5 [0] : vector<1x8x128xf32> to vector<8x128xf32>
    %27 = vector.shape_cast %24 : vector<8x128xf32> to vector<1x8x128xf32>
    %cst_6 = arith.constant dense<0.000000e+00> : vector<8x128xf32>
    %28 = vector.multi_reduction <add>, %27, %cst_6 [0] : vector<1x8x128xf32> to vector<8x128xf32>
    %c0_7 = arith.constant 0 : index
    %c0_8 = arith.constant 0 : index
    %c0_9 = arith.constant 0 : index
    %c0_10 = arith.constant 0 : index
    %29 = vector.load %arg5[%c0_7, %c0_8, %c0_9, %c0_10] : memref<1x5x8x128xf32, #tpu.memory_space<vmem>>, vector<1x1x8x128xf32>
    %30 = vector.shape_cast %29 : vector<1x1x8x128xf32> to vector<8x128xf32>
    %31 = arith.addf %30, %26 : vector<8x128xf32>
    %c0_11 = arith.constant 0 : index
    %c0_12 = arith.constant 0 : index
    %c0_13 = arith.constant 0 : index
    %c0_14 = arith.constant 0 : index
    %32 = vector.load %arg5[%c0_11, %c0_12, %c0_13, %c0_14] : memref<1x5x8x128xf32, #tpu.memory_space<vmem>>, vector<1x1x8x128xf32>
    %33 = vector.shape_cast %32 : vector<1x1x8x128xf32> to vector<8x128xf32>
    %34 = vector.shape_cast %31 : vector<8x128xf32> to vector<1x1x8x128xf32>
    tpu.vector_store %arg5[%c0_11, %c0_12, %c0_13, %c0_14], %34 {strides = array<i32>} : memref<1x5x8x128xf32, #tpu.memory_space<vmem>>, vector<1x1x8x128xf32>,
    %c0_15 = arith.constant 0 : index
    %c0_16 = arith.constant 0 : index
    %c0_17 = arith.constant 0 : index
    %c0_18 = arith.constant 0 : index
    %35 = vector.load %arg4[%c0_15, %c0_16, %c0_17, %c0_18] : memref<1x5x8x128xf32, #tpu.memory_space<vmem>>, vector<1x1x8x128xf32>
    %36 = vector.shape_cast %35 : vector<1x1x8x128xf32> to vector<8x128xf32>
    %37 = arith.addf %36, %28 : vector<8x128xf32>
    %c0_19 = arith.constant 0 : index
    %c0_20 = arith.constant 0 : index
    %c0_21 = arith.constant 0 : index
    %c0_22 = arith.constant 0 : index
    %38 = vector.load %arg4[%c0_19, %c0_20, %c0_21, %c0_22] : memref<1x5x8x128xf32, #tpu.memory_space<vmem>>, vector<1x1x8x128xf32>
    %39 = vector.shape_cast %38 : vector<1x1x8x128xf32> to vector<8x128xf32>
    %40 = vector.shape_cast %37 : vector<8x128xf32> to vector<1x1x8x128xf32>
    tpu.vector_store %arg4[%c0_19, %c0_20, %c0_21, %c0_22], %40 {strides = array<i32>} : memref<1x5x8x128xf32, #tpu.memory_space<vmem>>, vector<1x1x8x128xf32>,
    %c1_i32_23 = arith.constant 1 : i32
    %41 = vector.broadcast %c1_i32_23 : i32 to vector<8x128xi32>
    %42 = arith.cmpi eq, %18, %41 : vector<8x128xi32>
    %43 = arith.extui %42 : vector<8x128xi1> to vector<8x128xi32>
    %44 = arith.sitofp %43 : vector<8x128xi32> to vector<8x128xf32>
    %cst_24 = arith.constant 0.000000e+00 : f32
    %45 = vector.broadcast %cst_24 : f32 to vector<8x128xf32>
    %46 = arith.select %42, %3, %45 : vector<8x128xi1>, vector<8x128xf32>
    %47 = vector.shape_cast %44 : vector<8x128xf32> to vector<1x8x128xf32>
    %cst_25 = arith.constant dense<0.000000e+00> : vector<8x128xf32>
    %48 = vector.multi_reduction <add>, %47, %cst_25 [0] : vector<1x8x128xf32> to vector<8x128xf32>
    %49 = vector.shape_cast %46 : vector<8x128xf32> to vector<1x8x128xf32>
    %cst_26 = arith.constant dense<0.000000e+00> : vector<8x128xf32>
    %50 = vector.multi_reduction <add>, %49, %cst_26 [0] : vector<1x8x128xf32> to vector<8x128xf32>
    %c0_27 = arith.constant 0 : index
    %c1 = arith.constant 1 : index
    %c0_28 = arith.constant 0 : index
    %c0_29 = arith.constant 0 : index
    %51 = vector.load %arg5[%c0_27, %c1, %c0_28, %c0_29] : memref<1x5x8x128xf32, #tpu.memory_space<vmem>>, vector<1x1x8x128xf32>
    %52 = vector.shape_cast %51 : vector<1x1x8x128xf32> to vector<8x128xf32>
    %53 = arith.addf %52, %48 : vector<8x128xf32>
    %c0_30 = arith.constant 0 : index
    %c1_31 = arith.constant 1 : index
    %c0_32 = arith.constant 0 : index
    %c0_33 = arith.constant 0 : index
    %54 = vector.load %arg5[%c0_30, %c1_31, %c0_32, %c0_33] : memref<1x5x8x128xf32, #tpu.memory_space<vmem>>, vector<1x1x8x128xf32>
    %55 = vector.shape_cast %54 : vector<1x1x8x128xf32> to vector<8x128xf32>
    %56 = vector.shape_cast %53 : vector<8x128xf32> to vector<1x1x8x128xf32>
    tpu.vector_store %arg5[%c0_30, %c1_31, %c0_32, %c0_33], %56 {strides = array<i32>} : memref<1x5x8x128xf32, #tpu.memory_space<vmem>>, vector<1x1x8x128xf32>,
    %c0_34 = arith.constant 0 : index
    %c1_35 = arith.constant 1 : index
    %c0_36 = arith.constant 0 : index
    %c0_37 = arith.constant 0 : index
    %57 = vector.load %arg4[%c0_34, %c1_35, %c0_36, %c0_37] : memref<1x5x8x128xf32, #tpu.memory_space<vmem>>, vector<1x1x8x128xf32>
    %58 = vector.shape_cast %57 : vector<1x1x8x128xf32> to vector<8x128xf32>
    %59 = arith.addf %58, %50 : vector<8x128xf32>
    %c0_38 = arith.constant 0 : index
    %c1_39 = arith.constant 1 : index
    %c0_40 = arith.constant 0 : index
    %c0_41 = arith.constant 0 : index
    %60 = vector.load %arg4[%c0_38, %c1_39, %c0_40, %c0_41] : memref<1x5x8x128xf32, #tpu.memory_space<vmem>>, vector<1x1x8x128xf32>
    %61 = vector.shape_cast %60 : vector<1x1x8x128xf32> to vector<8x128xf32>
    %62 = vector.shape_cast %59 : vector<8x128xf32> to vector<1x1x8x128xf32>
    tpu.vector_store %arg4[%c0_38, %c1_39, %c0_40, %c0_41], %62 {strides = array<i32>} : memref<1x5x8x128xf32, #tpu.memory_space<vmem>>, vector<1x1x8x128xf32>,
    %c2_i32 = arith.constant 2 : i32
    %63 = vector.broadcast %c2_i32 : i32 to vector<8x128xi32>
    %64 = arith.cmpi eq, %18, %63 : vector<8x128xi32>
    %65 = arith.extui %64 : vector<8x128xi1> to vector<8x128xi32>
    %66 = arith.sitofp %65 : vector<8x128xi32> to vector<8x128xf32>
    %cst_42 = arith.constant 0.000000e+00 : f32
    %67 = vector.broadcast %cst_42 : f32 to vector<8x128xf32>
    %68 = arith.select %64, %3, %67 : vector<8x128xi1>, vector<8x128xf32>
    %69 = vector.shape_cast %66 : vector<8x128xf32> to vector<1x8x128xf32>
    %cst_43 = arith.constant dense<0.000000e+00> : vector<8x128xf32>
    %70 = vector.multi_reduction <add>, %69, %cst_43 [0] : vector<1x8x128xf32> to vector<8x128xf32>
    %71 = vector.shape_cast %68 : vector<8x128xf32> to vector<1x8x128xf32>
    %cst_44 = arith.constant dense<0.000000e+00> : vector<8x128xf32>
    %72 = vector.multi_reduction <add>, %71, %cst_44 [0] : vector<1x8x128xf32> to vector<8x128xf32>
    %c0_45 = arith.constant 0 : index
    %c2 = arith.constant 2 : index
    %c0_46 = arith.constant 0 : index
    %c0_47 = arith.constant 0 : index
    %73 = vector.load %arg5[%c0_45, %c2, %c0_46, %c0_47] : memref<1x5x8x128xf32, #tpu.memory_space<vmem>>, vector<1x1x8x128xf32>
    %74 = vector.shape_cast %73 : vector<1x1x8x128xf32> to vector<8x128xf32>
    %75 = arith.addf %74, %70 : vector<8x128xf32>
    %c0_48 = arith.constant 0 : index
    %c2_49 = arith.constant 2 : index
    %c0_50 = arith.constant 0 : index
    %c0_51 = arith.constant 0 : index
    %76 = vector.load %arg5[%c0_48, %c2_49, %c0_50, %c0_51] : memref<1x5x8x128xf32, #tpu.memory_space<vmem>>, vector<1x1x8x128xf32>
    %77 = vector.shape_cast %76 : vector<1x1x8x128xf32> to vector<8x128xf32>
    %78 = vector.shape_cast %75 : vector<8x128xf32> to vector<1x1x8x128xf32>
    tpu.vector_store %arg5[%c0_48, %c2_49, %c0_50, %c0_51], %78 {strides = array<i32>} : memref<1x5x8x128xf32, #tpu.memory_space<vmem>>, vector<1x1x8x128xf32>,
    %c0_52 = arith.constant 0 : index
    %c2_53 = arith.constant 2 : index
    %c0_54 = arith.constant 0 : index
    %c0_55 = arith.constant 0 : index
    %79 = vector.load %arg4[%c0_52, %c2_53, %c0_54, %c0_55] : memref<1x5x8x128xf32, #tpu.memory_space<vmem>>, vector<1x1x8x128xf32>
    %80 = vector.shape_cast %79 : vector<1x1x8x128xf32> to vector<8x128xf32>
    %81 = arith.addf %80, %72 : vector<8x128xf32>
    %c0_56 = arith.constant 0 : index
    %c2_57 = arith.constant 2 : index
    %c0_58 = arith.constant 0 : index
    %c0_59 = arith.constant 0 : index
    %82 = vector.load %arg4[%c0_56, %c2_57, %c0_58, %c0_59] : memref<1x5x8x128xf32, #tpu.memory_space<vmem>>, vector<1x1x8x128xf32>
    %83 = vector.shape_cast %82 : vector<1x1x8x128xf32> to vector<8x128xf32>
    %84 = vector.shape_cast %81 : vector<8x128xf32> to vector<1x1x8x128xf32>
    tpu.vector_store %arg4[%c0_56, %c2_57, %c0_58, %c0_59], %84 {strides = array<i32>} : memref<1x5x8x128xf32, #tpu.memory_space<vmem>>, vector<1x1x8x128xf32>,
    %c3_i32 = arith.constant 3 : i32
    %85 = vector.broadcast %c3_i32 : i32 to vector<8x128xi32>
    %86 = arith.cmpi eq, %18, %85 : vector<8x128xi32>
    %87 = arith.extui %86 : vector<8x128xi1> to vector<8x128xi32>
    %88 = arith.sitofp %87 : vector<8x128xi32> to vector<8x128xf32>
    %cst_60 = arith.constant 0.000000e+00 : f32
    %89 = vector.broadcast %cst_60 : f32 to vector<8x128xf32>
    %90 = arith.select %86, %3, %89 : vector<8x128xi1>, vector<8x128xf32>
    %91 = vector.shape_cast %88 : vector<8x128xf32> to vector<1x8x128xf32>
    %cst_61 = arith.constant dense<0.000000e+00> : vector<8x128xf32>
    %92 = vector.multi_reduction <add>, %91, %cst_61 [0] : vector<1x8x128xf32> to vector<8x128xf32>
    %93 = vector.shape_cast %90 : vector<8x128xf32> to vector<1x8x128xf32>
    %cst_62 = arith.constant dense<0.000000e+00> : vector<8x128xf32>
    %94 = vector.multi_reduction <add>, %93, %cst_62 [0] : vector<1x8x128xf32> to vector<8x128xf32>
    %c0_63 = arith.constant 0 : index
    %c3 = arith.constant 3 : index
    %c0_64 = arith.constant 0 : index
    %c0_65 = arith.constant 0 : index
    %95 = vector.load %arg5[%c0_63, %c3, %c0_64, %c0_65] : memref<1x5x8x128xf32, #tpu.memory_space<vmem>>, vector<1x1x8x128xf32>
    %96 = vector.shape_cast %95 : vector<1x1x8x128xf32> to vector<8x128xf32>
    %97 = arith.addf %96, %92 : vector<8x128xf32>
    %c0_66 = arith.constant 0 : index
    %c3_67 = arith.constant 3 : index
    %c0_68 = arith.constant 0 : index
    %c0_69 = arith.constant 0 : index
    %98 = vector.load %arg5[%c0_66, %c3_67, %c0_68, %c0_69] : memref<1x5x8x128xf32, #tpu.memory_space<vmem>>, vector<1x1x8x128xf32>
    %99 = vector.shape_cast %98 : vector<1x1x8x128xf32> to vector<8x128xf32>
    %100 = vector.shape_cast %97 : vector<8x128xf32> to vector<1x1x8x128xf32>
    tpu.vector_store %arg5[%c0_66, %c3_67, %c0_68, %c0_69], %100 {strides = array<i32>} : memref<1x5x8x128xf32, #tpu.memory_space<vmem>>, vector<1x1x8x128xf32>,
    %c0_70 = arith.constant 0 : index
    %c3_71 = arith.constant 3 : index
    %c0_72 = arith.constant 0 : index
    %c0_73 = arith.constant 0 : index
    %101 = vector.load %arg4[%c0_70, %c3_71, %c0_72, %c0_73] : memref<1x5x8x128xf32, #tpu.memory_space<vmem>>, vector<1x1x8x128xf32>
    %102 = vector.shape_cast %101 : vector<1x1x8x128xf32> to vector<8x128xf32>
    %103 = arith.addf %102, %94 : vector<8x128xf32>
    %c0_74 = arith.constant 0 : index
    %c3_75 = arith.constant 3 : index
    %c0_76 = arith.constant 0 : index
    %c0_77 = arith.constant 0 : index
    %104 = vector.load %arg4[%c0_74, %c3_75, %c0_76, %c0_77] : memref<1x5x8x128xf32, #tpu.memory_space<vmem>>, vector<1x1x8x128xf32>
    %105 = vector.shape_cast %104 : vector<1x1x8x128xf32> to vector<8x128xf32>
    %106 = vector.shape_cast %103 : vector<8x128xf32> to vector<1x1x8x128xf32>
    tpu.vector_store %arg4[%c0_74, %c3_75, %c0_76, %c0_77], %106 {strides = array<i32>} : memref<1x5x8x128xf32, #tpu.memory_space<vmem>>, vector<1x1x8x128xf32>,
    %c4_i32 = arith.constant 4 : i32
    %107 = vector.broadcast %c4_i32 : i32 to vector<8x128xi32>
    %108 = arith.cmpi eq, %18, %107 : vector<8x128xi32>
    %109 = arith.extui %108 : vector<8x128xi1> to vector<8x128xi32>
    %110 = arith.sitofp %109 : vector<8x128xi32> to vector<8x128xf32>
    %cst_78 = arith.constant 0.000000e+00 : f32
    %111 = vector.broadcast %cst_78 : f32 to vector<8x128xf32>
    %112 = arith.select %108, %3, %111 : vector<8x128xi1>, vector<8x128xf32>
    %113 = vector.shape_cast %110 : vector<8x128xf32> to vector<1x8x128xf32>
    %cst_79 = arith.constant dense<0.000000e+00> : vector<8x128xf32>
    %114 = vector.multi_reduction <add>, %113, %cst_79 [0] : vector<1x8x128xf32> to vector<8x128xf32>
    %115 = vector.shape_cast %112 : vector<8x128xf32> to vector<1x8x128xf32>
    %cst_80 = arith.constant dense<0.000000e+00> : vector<8x128xf32>
    %116 = vector.multi_reduction <add>, %115, %cst_80 [0] : vector<1x8x128xf32> to vector<8x128xf32>
    %c0_81 = arith.constant 0 : index
    %c4 = arith.constant 4 : index
    %c0_82 = arith.constant 0 : index
    %c0_83 = arith.constant 0 : index
    %117 = vector.load %arg5[%c0_81, %c4, %c0_82, %c0_83] : memref<1x5x8x128xf32, #tpu.memory_space<vmem>>, vector<1x1x8x128xf32>
    %118 = vector.shape_cast %117 : vector<1x1x8x128xf32> to vector<8x128xf32>
    %119 = arith.addf %118, %114 : vector<8x128xf32>
    %c0_84 = arith.constant 0 : index
    %c4_85 = arith.constant 4 : index
    %c0_86 = arith.constant 0 : index
    %c0_87 = arith.constant 0 : index
    %120 = vector.load %arg5[%c0_84, %c4_85, %c0_86, %c0_87] : memref<1x5x8x128xf32, #tpu.memory_space<vmem>>, vector<1x1x8x128xf32>
    %121 = vector.shape_cast %120 : vector<1x1x8x128xf32> to vector<8x128xf32>
    %122 = vector.shape_cast %119 : vector<8x128xf32> to vector<1x1x8x128xf32>
    tpu.vector_store %arg5[%c0_84, %c4_85, %c0_86, %c0_87], %122 {strides = array<i32>} : memref<1x5x8x128xf32, #tpu.memory_space<vmem>>, vector<1x1x8x128xf32>,
    %c0_88 = arith.constant 0 : index
    %c4_89 = arith.constant 4 : index
    %c0_90 = arith.constant 0 : index
    %c0_91 = arith.constant 0 : index
    %123 = vector.load %arg4[%c0_88, %c4_89, %c0_90, %c0_91] : memref<1x5x8x128xf32, #tpu.memory_space<vmem>>, vector<1x1x8x128xf32>
    %124 = vector.shape_cast %123 : vector<1x1x8x128xf32> to vector<8x128xf32>
    %125 = arith.addf %124, %116 : vector<8x128xf32>
    %c0_92 = arith.constant 0 : index
    %c4_93 = arith.constant 4 : index
    %c0_94 = arith.constant 0 : index
    %c0_95 = arith.constant 0 : index
    %126 = vector.load %arg4[%c0_92, %c4_93, %c0_94, %c0_95] : memref<1x5x8x128xf32, #tpu.memory_space<vmem>>, vector<1x1x8x128xf32>
    %127 = vector.shape_cast %126 : vector<1x1x8x128xf32> to vector<8x128xf32>
    %128 = vector.shape_cast %125 : vector<8x128xf32> to vector<1x1x8x128xf32>
    tpu.vector_store %arg4[%c0_92, %c4_93, %c0_94, %c0_95], %128 {strides = array<i32>} : memref<1x5x8x128xf32, #tpu.memory_space<vmem>>, vector<1x1x8x128xf32>,
    return
  }
  func.func @transform_0(%arg0: i32, %arg1: i32) -> (i32, i32) {
    %c1_i32 = arith.constant 1 : i32
    %0 = arith.muli %arg0, %c1_i32 : i32
    %1 = arith.addi %0, %arg1 : i32
    %c0_i32 = arith.constant 0 : i32
    %2 = arith.minsi %1, %c0_i32 : i32
    %c0_i32_0 = arith.constant 0 : i32
    %c0_i32_1 = arith.constant 0 : i32
    return %2, %c0_i32_0 : i32, i32
  }
  func.func @transform_1(%arg0: i32, %arg1: i32) -> (i32, i32) {
    %c1_i32 = arith.constant 1 : i32
    %0 = arith.muli %arg0, %c1_i32 : i32
    %1 = arith.addi %0, %arg1 : i32
    %c0_i32 = arith.constant 0 : i32
    %2 = arith.minsi %1, %c0_i32 : i32
    %c0_i32_0 = arith.constant 0 : i32
    %c0_i32_1 = arith.constant 0 : i32
    return %2, %c0_i32_0 : i32, i32
  }
  func.func @transform_2(%arg0: i32, %arg1: i32) -> (i32, i32, i32, i32) {
    %c0_i32 = arith.constant 0 : i32
    %c0_i32_0 = arith.constant 0 : i32
    %c0_i32_1 = arith.constant 0 : i32
    %c0_i32_2 = arith.constant 0 : i32
    return %arg0, %c0_i32, %c0_i32_0, %c0_i32_1 : i32, i32, i32, i32
  }
  func.func @transform_3(%arg0: i32, %arg1: i32) -> (i32, i32, i32, i32) {
    %c0_i32 = arith.constant 0 : i32
    %c0_i32_0 = arith.constant 0 : i32
    %c0_i32_1 = arith.constant 0 : i32
    %c0_i32_2 = arith.constant 0 : i32
    return %arg0, %c0_i32, %c0_i32_0, %c0_i32_1 : i32, i32, i32, i32
  }
}

</mosaic_0001>

<bundles_post_ra>
// kernel: lhcvar_loss.1
= control target key start
LH: loop header
LB: loop body
LE: loop exit
PB: predicated region body
PF: predicated region fallthrough
CT: control target
= control target key end

     0   :  { %v85_v0 = vlaneseq  ;;  %v205_v8 = vmov 0.0   ;;  %s262_s1 = inlined_call_operand.vmem [shape: s32[8,128], index: 1, kind: input, shape index: {}]   ;;  %s263_s0 = inlined_call_operand.vmem [shape: f32[8,128], index: 0, kind: input, shape index: {}]   ;;  %s264_s2 = inlined_call_operand.vmem [shape: f32[1,5,8,128], index: 2, kind: output, shape index: {0}]   ;;  %s265_s3 = inlined_call_operand.vmem [shape: f32[1,5,8,128], index: 3, kind: output, shape index: {1}]  }
   0x1   :  { %v82_v4 = vld [vmem:[%s262_s1] sm:$0xff] }
   0x2   :  { %v86_v1 = vshrl.u32 %v85_v0, 7  ;;  %v88_v2 = vand.u32 127, %v85_v0  ;;  %v81_v6 = vld [vmem:[%s263_s0] sm:$0xff] }
   0x4   :  { %v89_v3 = vmul.u32 128, %v86_v1 }
   0x6   :  { %v92_v5 = vadd.s32 %v89_v3, %v88_v2 }
   0x8   :  { %vm93_vm0 = vcmp.lt.s32.totalorder %v92_v5, 300 }
   0x9   :  { %v94_v7 = vsel %vm93_vm0, %v82_v4, 4294967295 }
   0xa   :  { %vm95_vm1 = vcmp.eq.s32.totalorder %v94_v7, 0  ;;  %vm107_vm2 = vcmp.eq.s32.totalorder %v94_v7, 1  ;;  %vm121_vm3 = vcmp.eq.s32.totalorder %v94_v7, 2  ;;  %vm135_vm4 = vcmp.eq.s32.totalorder %v94_v7, 3 }
   0xb   :  { %v183_v9 = vsel %vm95_vm1, 1.0, %v205_v8  ;;  %v98_v10 = vsel %vm95_vm1, %v81_v6, 0.0  ;;  %v184_v11 = vsel %vm107_vm2, 1.0, %v205_v8  ;;  %v110_v12 = vsel %vm107_vm2, %v81_v6, 0.0 }
   0xc   :  { %v189_v13 = vsel %vm121_vm3, 1.0, %v205_v8  ;;  %v124_v14 = vsel %vm121_vm3, %v81_v6, 0.0  ;;  %v194_v15 = vsel %vm135_vm4, 1.0, %v205_v8  ;;  %v138_v16 = vsel %vm135_vm4, %v81_v6, 0.0  ;;  %103 = vst [vmem:[%s265_s3] sm:$0xff] %v183_v9  ;;  %106 = vst [vmem:[%s264_s2] sm:$0xff] %v98_v10 }
   0xd   :  { %186 = vst [vmem:[%s265_s3 + $0x8] sm:$0xff] %v184_v11  ;;  %188 = vst [vmem:[%s264_s2 + $0x8] sm:$0xff] %v110_v12  ;;  %vm149_vm5 = vcmp.eq.s32.totalorder %v94_v7, 4 }
   0xe   :  { %191 = vst [vmem:[%s265_s3 + $0x10] sm:$0xff] %v189_v13  ;;  %193 = vst [vmem:[%s264_s2 + $0x10] sm:$0xff] %v124_v14  ;;  %v199_v17 = vsel %vm149_vm5, 1.0, %v205_v8  ;;  %v152_v18 = vsel %vm149_vm5, %v81_v6, 0.0 }
   0xf   :  { %196 = vst [vmem:[%s265_s3 + $0x18] sm:$0xff] %v194_v15  ;;  %198 = vst [vmem:[%s264_s2 + $0x18] sm:$0xff] %v138_v16 }
  0x10   :  { %201 = vst [vmem:[%s265_s3 + $0x20] sm:$0xff] %v199_v17  ;;  %203 = vst [vmem:[%s264_s2 + $0x20] sm:$0xff] %v152_v18 }

</bundles_post_ra>
